<compile_context>
chip_gen: v7x
topology: tpu7x:2x2x1
jax: 0.10.0
libtpu: 0.0.40
codegen_flags: <defaults>
</compile_context>

<pallas_src>
import jax
import jax.numpy as jnp
from jax.experimental import pallas as pl
from jax.experimental.pallas import tpu as pltpu


def _round_up(x, m):
    return ((x + m - 1) // m) * m


def _pad2(a, rows, cols):
    pr, pc = rows - a.shape[0], cols - a.shape[1]
    if pr == 0 and pc == 0:
        return a
    return jnp.pad(a, ((0, pr), (0, pc)))


def mlp_kernel(x_ref, w1_ref, b1_ref, w2_ref, b2_ref, o_ref):
    # First linear layer (MXU, f32 accumulate) + bias + sigmoid (EUP), all f32.
    x = x_ref[...]                                               # [tb, D_in]
    h = jnp.dot(x, w1_ref[...], preferred_element_type=jnp.float32)
    h = jax.nn.sigmoid(h + b1_ref[...])                          # keep f32 for the activation
    # Downcast only if the second weight matrix is sub-32-bit (halves MXU
    # input bandwidth for bf16 weights; no-op for f32).
    if w2_ref.dtype != jnp.float32:
        h = h.astype(w2_ref.dtype)
    # Second linear layer.
    y = jnp.dot(h, w2_ref[...], preferred_element_type=jnp.float32)
    o_ref[...] = (y + b2_ref[...]).astype(o_ref.dtype)


def mlp_forward(x, w1, b1, w2, b2, *, block_b=None):
    B, d_in = x.shape
    d_hidden = w1.shape[1]
    d_out = w2.shape[1]

    # Lane-dense padded feature dims (multiples of 128).
    d_in_p = _round_up(d_in, 128)
    d_h_p = _round_up(d_hidden, 128)
    d_out_p = _round_up(d_out, 128)

    # Batch tile: real tiling (not the whole batch) so the grid has many steps.
    if block_b is None:
        block_b = min(512, _round_up(B, 8))
    assert block_b % 8 == 0, "block_b must be a multiple of 8 (f32 sublane tiling)"
    B_p = _round_up(B, block_b)
    grid = (B_p // block_b,)

    # Zero-pad operands (exact, see header comment).
    x_p = _pad2(x, B_p, d_in_p)
    w1_p = _pad2(w1, d_in_p, d_h_p)
    b1_p = _pad2(b1.reshape(1, -1), 1, d_h_p)
    w2_p = _pad2(w2, d_h_p, d_out_p)
    b2_p = _pad2(b2.reshape(1, -1), 1, d_out_p)

    # Explicit VMEM budget: double-buffered x/out tiles, single-buffered
    # resident weights/biases, plus the f32 intermediate h and headroom.
    x_bytes = jnp.dtype(x.dtype).itemsize
    w_bytes = jnp.dtype(w1.dtype).itemsize
    vmem_needed = (
        2 * block_b * d_in_p * x_bytes            # x tile (double buffer)
        + d_in_p * d_h_p * w_bytes                # w1 (resident, 1 buffer)
        + d_h_p * w_bytes                         # b1
        + d_h_p * d_out_p * w_bytes               # w2 (resident, 1 buffer)
        + d_out_p * w_bytes                       # b2
        + 2 * block_b * d_out_p * x_bytes         # out tile (double buffer)
        + 4 * block_b * d_h_p                     # f32 intermediate h
    )
    vmem_limit = min(int(2 * vmem_needed) + (4 << 20), 128 << 20)

    def build(resident_mode):
        w_kw = {} if resident_mode is None else {"pipeline_mode": resident_mode}
        return pl.pallas_call(
            mlp_kernel,
            out_shape=jax.ShapeDtypeStruct((B_p, d_out_p), x.dtype),
            grid_spec=pltpu.PrefetchScalarGridSpec(
                num_scalar_prefetch=0,
                grid=grid,
                in_specs=[
                    pl.BlockSpec((block_b, d_in_p), lambda i: (i, 0)),            # x tile
                    pl.BlockSpec((d_in_p, d_h_p), lambda i: (0, 0), **w_kw),      # w1 resident
                    pl.BlockSpec((1, d_h_p), lambda i: (0, 0), **w_kw),           # b1 resident
                    pl.BlockSpec((d_h_p, d_out_p), lambda i: (0, 0), **w_kw),     # w2 resident
                    pl.BlockSpec((1, d_out_p), lambda i: (0, 0), **w_kw),         # b2 resident
                ],
                out_specs=pl.BlockSpec((block_b, d_out_p), lambda i: (i, 0)),
            ),
            compiler_params=pltpu.CompilerParams(
                dimension_semantics=("parallel",),
                vmem_limit_bytes=vmem_limit,
            ),
        )

    try:
        # Grid-invariant operands only need a single buffer.
        out_p = build(pl.Buffered(1))(x_p, w1_p, b1_p, w2_p, b2_p)
    except Exception:
        # Fallback: default (double-buffered) pipelining for the weights.
        out_p = build(None)(x_p, w1_p, b1_p, w2_p, b2_p)

    return out_p[:B, :d_out]


def init_mlp_params(key, input_dim, hidden_dim, output_dim, dtype=jnp.float32):
    # Mirrors torch.nn.Linear's U(-1/sqrt(fan_in), 1/sqrt(fan_in)) init.
    k1, k2, k3, k4 = jax.random.split(key, 4)
    bound1 = 1.0 / (input_dim ** 0.5)
    bound2 = 1.0 / (hidden_dim ** 0.5)
    w1 = jax.random.uniform(k1, (input_dim, hidden_dim), dtype, -bound1, bound1)
    b1 = jax.random.uniform(k2, (1, hidden_dim), dtype, -bound1, bound1)
    w2 = jax.random.uniform(k3, (hidden_dim, output_dim), dtype, -bound2, bound2)
    b2 = jax.random.uniform(k4, (1, output_dim), dtype, -bound2, bound2)
    return w1, b1, w2, b2


if __name__ == "__main__":
    key = jax.random.PRNGKey(0)
    kx, kp = jax.random.split(key)

    batch, input_dim, hidden_dim, output_dim = 32, 16, 32, 8
    x = jax.random.normal(kx, (batch, input_dim), jnp.float32)
    w1, b1, w2, b2 = init_mlp_params(kp, input_dim, hidden_dim, output_dim)

    # block_b=8 -> grid=(4,) so the batch-tiled pipeline path is exercised even
    # at this small demo size (the default picks ~512-row tiles for big B).
    y = mlp_forward(x, w1, b1, w2, b2, block_b=8)
    y = jax.block_until_ready(y)

    # Pure-JAX reference (same semantics as the PyTorch forward).
    ref = jax.nn.sigmoid(x @ w1 + b1) @ w2 + b2
    assert y.shape == (batch, output_dim)
    assert jnp.allclose(y, ref, atol=1e-5, rtol=1e-5)

    print("KERNEL_OK")
</pallas_src>

<mosaic_0001>
module attributes {stable_mosaic.version = 11 : i64} {
  func.func @mlp_kernel(%arg0: i32, %arg1: memref<8x128xf32, #tpu.memory_space<vmem>>, %arg2: memref<128x128xf32, #tpu.memory_space<vmem>>, %arg3: memref<1x128xf32, #tpu.memory_space<vmem>>, %arg4: memref<128x128xf32, #tpu.memory_space<vmem>>, %arg5: memref<1x128xf32, #tpu.memory_space<vmem>>, %arg6: memref<8x128xf32, #tpu.memory_space<vmem>>) attributes {dimension_semantics = [#tpu.dimension_semantics<parallel>], iteration_bounds = array<i64: 4>, scalar_prefetch = 0 : i64, scratch_operands = 0 : i64, tpu.core_type = #tpu.core_type<tc>, window_params = [{transform_indices = @transform_0, window_bounds = array<i64: 8, 128>}, {pipeline_mode = #tpu.pipeline_mode<synchronous>, transform_indices = @transform_1, window_bounds = array<i64: 128, 128>}, {pipeline_mode = #tpu.pipeline_mode<synchronous>, transform_indices = @transform_2, window_bounds = array<i64: 1, 128>}, {pipeline_mode = #tpu.pipeline_mode<synchronous>, transform_indices = @transform_3, window_bounds = array<i64: 128, 128>}, {pipeline_mode = #tpu.pipeline_mode<synchronous>, transform_indices = @transform_4, window_bounds = array<i64: 1, 128>}, {transform_indices = @transform_5, window_bounds = array<i64: 8, 128>}]} {
    %c0 = arith.constant 0 : index
    %c0_0 = arith.constant 0 : index
    %0 = vector.load %arg1[%c0, %c0_0] : memref<8x128xf32, #tpu.memory_space<vmem>>, vector<8x128xf32>
    %c0_1 = arith.constant 0 : index
    %c0_2 = arith.constant 0 : index
    %1 = vector.load %arg2[%c0_1, %c0_2] : memref<128x128xf32, #tpu.memory_space<vmem>>, vector<128x128xf32>
    %cst = arith.constant dense<0.000000e+00> : vector<8x128xf32>
    %2 = tpu.matmul %0, %1, %cst {dimension_numbers = #tpu.dot_dimension_numbers<[1], [0], [0], [1], [0, 0, 1, 1], [], []>} : vector<8x128xf32>, vector<128x128xf32>, vector<8x128xf32> -> vector<8x128xf32>
    %c0_3 = arith.constant 0 : index
    %c0_4 = arith.constant 0 : index
    %3 = vector.load %arg3[%c0_3, %c0_4] : memref<1x128xf32, #tpu.memory_space<vmem>>, vector<1x128xf32>
    %4 = vector.broadcast %3 : vector<1x128xf32> to vector<8x128xf32>
    %5 = arith.addf %2, %4 : vector<8x128xf32>
    %6 = arith.negf %5 : vector<8x128xf32>
    %7 = math.exp %6 : vector<8x128xf32>
    %cst_5 = arith.constant 1.000000e+00 : f32
    %8 = vector.broadcast %cst_5 : f32 to vector<8x128xf32>
    %9 = arith.addf %8, %7 : vector<8x128xf32>
    %10 = arith.divf %8, %9 : vector<8x128xf32>
    %c0_6 = arith.constant 0 : index
    %c0_7 = arith.constant 0 : index
    %11 = vector.load %arg4[%c0_6, %c0_7] : memref<128x128xf32, #tpu.memory_space<vmem>>, vector<128x128xf32>
    %cst_8 = arith.constant dense<0.000000e+00> : vector<8x128xf32>
    %12 = tpu.matmul %10, %11, %cst_8 {dimension_numbers = #tpu.dot_dimension_numbers<[1], [0], [0], [1], [0, 0, 1, 1], [], []>} : vector<8x128xf32>, vector<128x128xf32>, vector<8x128xf32> -> vector<8x128xf32>
    %c0_9 = arith.constant 0 : index
    %c0_10 = arith.constant 0 : index
    %13 = vector.load %arg5[%c0_9, %c0_10] : memref<1x128xf32, #tpu.memory_space<vmem>>, vector<1x128xf32>
    %14 = vector.broadcast %13 : vector<1x128xf32> to vector<8x128xf32>
    %15 = arith.addf %12, %14 : vector<8x128xf32>
    %c0_11 = arith.constant 0 : index
    %c0_12 = arith.constant 0 : index
    %16 = vector.load %arg6[%c0_11, %c0_12] : memref<8x128xf32, #tpu.memory_space<vmem>>, vector<8x128xf32>
    tpu.vector_store %arg6[%c0_11, %c0_12], %15 {strides = array<i32>} : memref<8x128xf32, #tpu.memory_space<vmem>>, vector<8x128xf32>,
    return
  }
  func.func @transform_0(%arg0: i32) -> (i32, i32) {
    %c0_i32 = arith.constant 0 : i32
    %c0_i32_0 = arith.constant 0 : i32
    return %arg0, %c0_i32 : i32, i32
  }
  func.func @transform_1(%arg0: i32) -> (i32, i32) {
    %c0_i32 = arith.constant 0 : i32
    %c0_i32_0 = arith.constant 0 : i32
    %c0_i32_1 = arith.constant 0 : i32
    return %c0_i32, %c0_i32_0 : i32, i32
  }
  func.func @transform_2(%arg0: i32) -> (i32, i32) {
    %c0_i32 = arith.constant 0 : i32
    %c0_i32_0 = arith.constant 0 : i32
    %c0_i32_1 = arith.constant 0 : i32
    return %c0_i32, %c0_i32_0 : i32, i32
  }
  func.func @transform_3(%arg0: i32) -> (i32, i32) {
    %c0_i32 = arith.constant 0 : i32
    %c0_i32_0 = arith.constant 0 : i32
    %c0_i32_1 = arith.constant 0 : i32
    return %c0_i32, %c0_i32_0 : i32, i32
  }
  func.func @transform_4(%arg0: i32) -> (i32, i32) {
    %c0_i32 = arith.constant 0 : i32
    %c0_i32_0 = arith.constant 0 : i32
    %c0_i32_1 = arith.constant 0 : i32
    return %c0_i32, %c0_i32_0 : i32, i32
  }
  func.func @transform_5(%arg0: i32) -> (i32, i32) {
    %c0_i32 = arith.constant 0 : i32
    %c0_i32_0 = arith.constant 0 : i32
    return %arg0, %c0_i32 : i32, i32
  }
}

module attributes {stable_mosaic.version = 11 : i64} {
  func.func @mlp_kernel(%arg0: i32, %arg1: memref<8x128xf32, #tpu.memory_space<vmem>>, %arg2: memref<128x128xf32, #tpu.memory_space<vmem>>, %arg3: memref<1x128xf32, #tpu.memory_space<vmem>>, %arg4: memref<128x128xf32, #tpu.memory_space<vmem>>, %arg5: memref<1x128xf32, #tpu.memory_space<vmem>>, %arg6: memref<8x128xf32, #tpu.memory_space<vmem>>) attributes {dimension_semantics = [#tpu.dimension_semantics<parallel>], iteration_bounds = array<i64: 4>, scalar_prefetch = 0 : i64, scratch_operands = 0 : i64, tpu.core_type = #tpu.core_type<tc>, window_params = [{transform_indices = @transform_0, window_bounds = array<i64: 8, 128>}, {pipeline_mode = #tpu.pipeline_mode<synchronous>, transform_indices = @transform_1, window_bounds = array<i64: 128, 128>}, {pipeline_mode = #tpu.pipeline_mode<synchronous>, transform_indices = @transform_2, window_bounds = array<i64: 1, 128>}, {pipeline_mode = #tpu.pipeline_mode<synchronous>, transform_indices = @transform_3, window_bounds = array<i64: 128, 128>}, {pipeline_mode = #tpu.pipeline_mode<synchronous>, transform_indices = @transform_4, window_bounds = array<i64: 1, 128>}, {transform_indices = @transform_5, window_bounds = array<i64: 8, 128>}]} {
    %c0 = arith.constant 0 : index
    %c0_0 = arith.constant 0 : index
    %0 = vector.load %arg1[%c0, %c0_0] : memref<8x128xf32, #tpu.memory_space<vmem>>, vector<8x128xf32>
    %c0_1 = arith.constant 0 : index
    %c0_2 = arith.constant 0 : index
    %1 = vector.load %arg2[%c0_1, %c0_2] : memref<128x128xf32, #tpu.memory_space<vmem>>, vector<128x128xf32>
    %cst = arith.constant dense<0.000000e+00> : vector<8x128xf32>
    %2 = tpu.matmul %0, %1, %cst {dimension_numbers = #tpu.dot_dimension_numbers<[1], [0], [0], [1], [0, 0, 1, 1], [], []>} : vector<8x128xf32>, vector<128x128xf32>, vector<8x128xf32> -> vector<8x128xf32>
    %c0_3 = arith.constant 0 : index
    %c0_4 = arith.constant 0 : index
    %3 = vector.load %arg3[%c0_3, %c0_4] : memref<1x128xf32, #tpu.memory_space<vmem>>, vector<1x128xf32>
    %4 = vector.broadcast %3 : vector<1x128xf32> to vector<8x128xf32>
    %5 = arith.addf %2, %4 : vector<8x128xf32>
    %6 = arith.negf %5 : vector<8x128xf32>
    %7 = math.exp %6 : vector<8x128xf32>
    %cst_5 = arith.constant 1.000000e+00 : f32
    %8 = vector.broadcast %cst_5 : f32 to vector<8x128xf32>
    %9 = arith.addf %8, %7 : vector<8x128xf32>
    %10 = arith.divf %8, %9 : vector<8x128xf32>
    %c0_6 = arith.constant 0 : index
    %c0_7 = arith.constant 0 : index
    %11 = vector.load %arg4[%c0_6, %c0_7] : memref<128x128xf32, #tpu.memory_space<vmem>>, vector<128x128xf32>
    %cst_8 = arith.constant dense<0.000000e+00> : vector<8x128xf32>
    %12 = tpu.matmul %10, %11, %cst_8 {dimension_numbers = #tpu.dot_dimension_numbers<[1], [0], [0], [1], [0, 0, 1, 1], [], []>} : vector<8x128xf32>, vector<128x128xf32>, vector<8x128xf32> -> vector<8x128xf32>
    %c0_9 = arith.constant 0 : index
    %c0_10 = arith.constant 0 : index
    %13 = vector.load %arg5[%c0_9, %c0_10] : memref<1x128xf32, #tpu.memory_space<vmem>>, vector<1x128xf32>
    %14 = vector.broadcast %13 : vector<1x128xf32> to vector<8x128xf32>
    %15 = arith.addf %12, %14 : vector<8x128xf32>
    %c0_11 = arith.constant 0 : index
    %c0_12 = arith.constant 0 : index
    %16 = vector.load %arg6[%c0_11, %c0_12] : memref<8x128xf32, #tpu.memory_space<vmem>>, vector<8x128xf32>
    tpu.vector_store %arg6[%c0_11, %c0_12], %15 {strides = array<i32>} : memref<8x128xf32, #tpu.memory_space<vmem>>, vector<8x128xf32>,
    return
  }
  func.func @transform_0(%arg0: i32) -> (i32, i32) {
    %c0_i32 = arith.constant 0 : i32
    %c0_i32_0 = arith.constant 0 : i32
    return %arg0, %c0_i32 : i32, i32
  }
  func.func @transform_1(%arg0: i32) -> (i32, i32) {
    %c0_i32 = arith.constant 0 : i32
    %c0_i32_0 = arith.constant 0 : i32
    %c0_i32_1 = arith.constant 0 : i32
    return %c0_i32, %c0_i32_0 : i32, i32
  }
  func.func @transform_2(%arg0: i32) -> (i32, i32) {
    %c0_i32 = arith.constant 0 : i32
    %c0_i32_0 = arith.constant 0 : i32
    %c0_i32_1 = arith.constant 0 : i32
    return %c0_i32, %c0_i32_0 : i32, i32
  }
  func.func @transform_3(%arg0: i32) -> (i32, i32) {
    %c0_i32 = arith.constant 0 : i32
    %c0_i32_0 = arith.constant 0 : i32
    %c0_i32_1 = arith.constant 0 : i32
    return %c0_i32, %c0_i32_0 : i32, i32
  }
  func.func @transform_4(%arg0: i32) -> (i32, i32) {
    %c0_i32 = arith.constant 0 : i32
    %c0_i32_0 = arith.constant 0 : i32
    %c0_i32_1 = arith.constant 0 : i32
    return %c0_i32, %c0_i32_0 : i32, i32
  }
  func.func @transform_5(%arg0: i32) -> (i32, i32) {
    %c0_i32 = arith.constant 0 : i32
    %c0_i32_0 = arith.constant 0 : i32
    return %arg0, %c0_i32 : i32, i32
  }
}

</mosaic_0001>

<bundles_post_ra>
// kernel: tpu_custom_call.1
= control target key start
LH: loop header
LB: loop body
LE: loop exit
PB: predicated region body
PF: predicated region fallthrough
CT: control target
= control target key end

     0   :  { %10 = vsyncpa [#allocation3], 0  ;;  %s1259_s0 = inlined_call_operand.hbm [shape: f32[32,128], index: 0, kind: input, shape index: {}]   ;;  %s1260_s1 = inlined_call_operand.hbm [shape: f32[128,128], index: 1, kind: input, shape index: {}]   ;;  %s1261_s2 = inlined_call_operand.vmem [shape: f32[1,128], index: 2, kind: input, shape index: {}]   ;;  %s1262_s3 = inlined_call_operand.hbm [shape: f32[128,128], index: 3, kind: input, shape index: {}]   ;;  %s1263_s4 = inlined_call_operand.vmem [shape: f32[1,128], index: 4, kind: input, shape index: {}]   ;;  %s1264_s5 = inlined_call_operand.hbm [shape: f32[32,128], index: 5, kind: output, shape index: {}]  }
   0x1   :  { %12 = vsyncpa [#allocation3 + $0x1], 0 }
   0x2   :  { %13 = vsyncpa [#allocation6], 0 }
   0x3   :  { %14 = vsyncpa [#allocation4], 0 }
   0x4   :  { %16 = vsyncpa [#allocation4 + $0x1], 0  ;;  %s1010_s18 = smov 0   ;;  %s1012_s19 = smov 0  }
   0x5   :  { %s1014_s20 = smov 0   ;;  %s1016_s21 = smov 0  }
   0x6 LB: > { %s1031_s22 = sadd.s32 4294967295, %s969_s21   ;;  %s566_s23 = sadd.s32 4294967294, %s969_s21   ;;  %s969_s21 = sphi %s1016_s21, %s1283_s21   ;;  %s965_s20 = sphi %s1014_s20, %s1282_s20   ;;  %s961_s19 = sphi %s1012_s19, %s1281_s19   ;;  %s957_s18 = sphi %s1010_s18, %s1280_s18  }
   0x7   : > { %p42_p0 = scmp.ne.s32.totalorder %s961_s19, %s957_s18  ;;  %p1265_p1 = scmp.eq.s32.totalorder %s1031_s22, 0 }
   0x8   : > { %p156_p3 = scmp.eq.s32.totalorder %s566_s23, 3  ;;  %p567_p5 = scmp.ge.s32.totalorder %s969_s21, 1 }
   0x9   : > { %p1040_p4 = por %p1265_p1, %p42_p0  ;;  %p163_p7 = scmp.lt.s32.totalorder %s969_s21, 5 }
   0xa   : > { %p1045_p6 = por %p156_p3, %p42_p0  ;;  %s971_s27 = smov [#allocation5]  }
   0xb   : > { %s1268_s24 = scalar_select %p1040_p4, 1, 0 }
   0xc   : > { %s1269_s25 = scalar_select %p1045_p6, 1, 0 }
   0xd   : > { %p1050_p8 = pnand %p567_p5, %p163_p7  ;;  %s175_s28 = sshll.u32 %s971_s27, 4  ;;  %s176_s28 = int_to_ptr.vmem [resolvable:$true] %s175_s28 }
   0xe   : > { %s972_s30 = smov [#allocation7]   ;;  %s813_s9 = scalar_lea.hbm %s1260_s1, 2048 }
   0xf   : > { %s1270_s26 = scalar_select %p1050_p8, 1, 0 }
  0x10   : > { %p749_p9 = pneg %p1050_p8  ;;  %s191_s6 = sshll.u32 %s972_s30, 4  ;;  %s1062_s6 = int_to_ptr.vmem [resolvable:$true] %s191_s6 }
  0x11   : > { %p814_p11 = scmp.ne.s32.totalorder %s1260_s1, %s813_s9  ;;  %p820_p3 = scmp.lt.u32.totalorder %s813_s9, %s1260_s1 }
  0x12   : > { %p1058_p10 = pnand %p749_p9, %p1265_p1 }
  0x14   : > { %p815_p12 = pneg %p1058_p10 }
  0x16   : > { %p816_p13 = pnand %p815_p12, %p814_p11 }
  0x18   : > { %p817_p0 = pneg %p816_p13 }
  0x1a   : > { %p822_p5 = pnand %p820_p3, %p817_p0 }
  0x1c   : > { %825 = shalt.err (!%p822_p5)
}
  0x1d   : > { %s826_s14 = scalar_lea.vmem %s176_s28, 2048  ;;  %p834_p2 = scmp.lt.s32.totalorder %s176_s28, %s176_s28 }
  0x1e   : > { %p827_p7 = scmp.ne.s32.totalorder %s176_s28, %s826_s14  ;;  %p835_p6 = scmp.lt.s32.totalorder %s826_s14, %s826_s14 }
  0x20   : > { %p829_p9 = pnand %p827_p7, %p815_p12  ;;  %p836_p4 = por %p835_p6, %p834_p2 }
  0x22   : > { %p830_p1 = pneg %p829_p9 }
  0x24   : > { %p837_p8 = pnand %p836_p4, %p830_p1 }
  0x26   : > { %840 = shalt.err (!%p837_p8)
}
  0x27   : > { %s973_s15 = smov 128   ;;  %s974_s16 = smov 8  }
  0x28   : > { %752 = dma.hbm_to_vmem [thread:$0]  (!%p1058_p10), %s1260_s1, 2048, %s176_s28, [#allocation6], %s973_s15, %s973_s15, %s974_s16  }
  0x29   : > { %s841_s7 = scalar_lea.hbm %s1262_s3, 2048 }
  0x2a   : > { %p842_p11 = scmp.ne.s32.totalorder %s1262_s3, %s841_s7  ;;  %p848_p4 = scmp.lt.u32.totalorder %s841_s7, %s1262_s3 }
  0x2c   : > { %p844_p1 = pnand %p842_p11, %p815_p12 }
  0x2e   : > { %p845_p2 = pneg %p844_p1 }
  0x30   : > { %p850_p6 = pnand %p848_p4, %p845_p2 }
  0x32   : > { %853 = shalt.err (!%p850_p6)
}
  0x33   : > { %s854_s28 = scalar_lea.vmem %s1062_s6, 2048  ;;  %p862_p3 = scmp.lt.s32.totalorder %s1062_s6, %s1062_s6 }
  0x34   : > { %p855_p8 = scmp.ne.s32.totalorder %s1062_s6, %s854_s28  ;;  %p863_p5 = scmp.lt.s32.totalorder %s854_s28, %s854_s28 }
  0x36   : > { %p857_p13 = pnand %p855_p8, %p815_p12  ;;  %p864_p7 = por %p863_p5, %p862_p3 }
  0x38   : > { %p858_p0 = pneg %p857_p13 }
  0x3a   : > { %p865_p9 = pnand %p864_p7, %p858_p0 }
  0x3c   : > { %868 = shalt.err (!%p865_p9)
}
  0x3d   : > { %755 = dma.hbm_to_vmem [thread:$0]  (!%p1058_p10), %s1262_s3, 2048, %s1062_s6, [#allocation6], %s973_s15, %s973_s15, %s974_s16  }
  0x3e   : > { %s1112_s14 = sadd.s32 1, %s969_s21   ;;  %s29_s29 = sadd.s32 1, %s965_s20 }
  0x3f   : > { %s26_s17 = ssub.s32 %s969_s21, %s1112_s14  ;;  %p36_p12 = scmp.ne.s32.totalorder %s965_s20, %s961_s19 }
  0x40   : > { %p27_p11 = scmp.eq.s32.totalorder %s26_s17, 0  ;;  %p37_p1 = scmp.eq.s32.totalorder %s969_s21, 0 }
  0x41   : > { %p1272_p2 = scmp.eq.s32.totalorder %s1031_s22, 3  ;;  %p766_p6 = scmp.lt.s32.totalorder %s969_s21, 4 }
  0x42   : > { %s1128_s27 = scalar_select %p27_p11, %s965_s20, %s29_s29  }
  0x43   : > { %p1122_p4 = por %p1272_p2, %p36_p12  ;;  %p38_p8 = por %p37_p1, %p36_p12 }
  0x44   : > { %s208_s30 = sand.u32 1, %s965_s20   ;;  %s572_s6 = sshll.u32 %s969_s21, 7 }
  0x45   : > { %s571_s7 = sshll.u32 %s208_s30, 3  ;;  %s1135_s8 = scalar_lea.hbm %s1259_s0, %s572_s6 }
  0x46   : > { %s212_s9 = scalar_lea.vmem [#allocation2], %s571_s7  ;;  %p1139_p10 = pnand %p766_p6, %p38_p8 }
  0x47   : > { %s219_s10 = sshll.u32 %s212_s9, 4  ;;  %s209_s28 = scalar_lea.sflag [#allocation3], %s208_s30  ;;  %s1137_s10 = int_to_ptr.vmem [resolvable:$true] %s219_s10 }
  0x48   : > { %s869_s12 = scalar_lea.hbm %s1135_s8, 128  ;;  %p871_p0 = pneg %p1139_p10 }
  0x49   : > { %p870_p13 = scmp.ne.s32.totalorder %s1135_s8, %s869_s12  ;;  %s874_s17 = scalar_lea.hbm %s1259_s0, 512 }
  0x4a   : > { %p875_p7 = scmp.lt.u32.totalorder %s1135_s8, %s1259_s0  ;;  %p876_p9 = scmp.lt.u32.totalorder %s874_s17, %s869_s12 }
  0x4b   : > { %p872_p3 = pnand %p871_p0, %p870_p13  ;;  %p878_p11 = scmp.lt.u32.totalorder %s869_s12, %s1135_s8 }
  0x4c   : > { %p877_p12 = por %p876_p9, %p875_p7 }
  0x4d   : > { %p873_p5 = pneg %p872_p3 }
  0x4e   : > { %p879_p1 = por %p878_p11, %p877_p12 }
  0x50   : > { %p880_p2 = pnand %p879_p1, %p873_p5 }
  0x52   : > { %883 = shalt.err (!%p880_p2)
}
  0x53   : > { %s884_s30 = scalar_lea.vmem %s1137_s10, 128  ;;  %s975_s15 = smov [#allocation2]  }
  0x54   : > { %p885_p6 = scmp.ne.s32.totalorder %s1137_s10, %s884_s30  ;;  %s889_s16 = sshll.u32 %s975_s15, 4  ;;  %s890_s16 = int_to_ptr.vmem [resolvable:$false] %s889_s16 }
  0x55   : > { %s891_s9 = scalar_lea.vmem %s890_s16, 256  ;;  %p892_p3 = scmp.lt.s32.totalorder %s1137_s10, %s890_s16 }
  0x56   : > { %p887_p8 = pnand %p885_p6, %p871_p0  ;;  %p893_p7 = scmp.lt.s32.totalorder %s891_s9, %s884_s30 }
  0x58   : > { %p888_p13 = pneg %p887_p8  ;;  %p894_p9 = por %p893_p7, %p892_p3 }
  0x5a   : > { %p895_p12 = pnand %p894_p9, %p888_p13 }
  0x5c   : > { %898 = shalt.err (!%p895_p12)
}
  0x5d   : > { %759 = dma.hbm_to_vmem [thread:$0]  (!%p1139_p10), %s1135_s8, 128, %s1137_s10, %s209_s28  }
  0x5e   : > { %p1275_p5 = scmp.ne.s32.totalorder %s1270_s26, 0 }
  0x5f   : > { %s1171_s12 = sand.u32 (!%p1275_p5), 1, %s961_s19   ;;  %p1276_p0 = scmp.ne.s32.totalorder (!%p1275_p5), %s1268_s24, 0 }
  0x60   : > { %228 = sbr.rel (%p1275_p5) target bundleno = 609 (0x261), region = 40  ;;  %s574_s13 = sshll.u32 (!%p1275_p5), %s1171_s12, 3 }
  0x61   : > { %s231_s29 = scalar_lea.sflag (!%p1275_p5), [#allocation3], %s1171_s12  ;;  %s1177_s17 = scalar_lea.vmem (!%p1275_p5), [#allocation2], %s574_s13 }
  0x67   : > { %944 = dma.done.wait (%p1276_p0), %s231_s29, 128  }
  0x68   : > { %946 = vsyncadd (%p1276_p0), %s231_s29, 4294967168  ;;  %p1277_p10 = scmp.eq.s32.totalorder %s1031_s22, 0 }
  0x6a   : > { %948 = dma.done.wait (%p1277_p10), [#allocation6], 4096   ;;  %p1278_p11 = pmov %p1277_p10 }
  0x6b   : > { %v976_v0 = vmov 0.0|0.0   ;;  %vm977_vm0 = vmmov 0   ;;  %v978_v1 = vmov 0.0   ;;  %v270_v2 = vld [vmem:[#allocation5] sm:$0xff]  ;;  %v271_v3 = vld [vmem:[#allocation5 + $0x8] sm:$0xff]  ;;  %v272_v4 = vld [vmem:[#allocation5 + $0x10] sm:$0xff] }
  0x6c   : > { %950 = vsyncadd (%p1278_p11), [#allocation6], 4294963200  ;;  %689 = vmatprep.subr.bf16.mxu0 %v976_v0  ;;  %651 = vmatprep.mubr.msk.f32.mxu0 %vm977_vm0, %v978_v1  ;;  %v690_v5 = vpack.c.bf16 %v271_v3, %v270_v2  ;;  %v273_v6 = vld [vmem:[#allocation5 + $0x18] sm:$0xff]  ;;  %v274_v8 = vld [vmem:[#allocation5 + $0x20] sm:$0xff]  ;;  %s582_s11 = sshll.u32 %s1031_s22, 7  ;;  %s268_s28 = scalar_lea.vmem [#allocation8], %s574_s13 }
  0x6d   : > { %713 = vmatprep.subr.bf16.mxu1 %v976_v0  ;;  %686 = vmatprep.mubr.msk.f32.mxu1 %vm977_vm0, %v978_v1  ;;  %v693_v7 = vpack.c.bf16 %v273_v6, %v272_v4  ;;  %v275_v9 = vld [vmem:[#allocation5 + $0x28] sm:$0xff]  ;;  %v369_v10 = vld [vmem:[#allocation7] sm:$0xff]  ;;  %v276_v14 = vld [vmem:[#allocation5 + $0x30] sm:$0xff]  ;;  %s477_s7 = sshll.u32 %s268_s28, 4  ;;  %s1216_s15 = scalar_lea.hbm %s1264_s5, %s582_s11  ;;  %s1218_s7 = int_to_ptr.vmem [resolvable:$true] %s477_s7 }
  0x6e   : > { %691 = vmatpush3.bf16.msra.mxu0 %v690_v5  ;;  %v370_v11 = vld [vmem:[#allocation7 + $0x8] sm:$0xff]  ;;  %v696_v12 = vpack.c.bf16 %v275_v9, %v274_v8  ;;  %v277_v15 = vld [vmem:[#allocation5 + $0x38] sm:$0xff]  ;;  %v278_v17 = vld [vmem:[#allocation5 + $0x40] sm:$0xff]  ;;  %s464_s16 = scalar_lea.sflag [#allocation4], %s1171_s12  ;;  %s899_s9 = scalar_lea.vmem %s1218_s7, 128 }
  0x6f   : > { %692 = vmatprep.subr.bf16.mxu0 %v976_v0  ;;  %v714_v13 = vpack.c.bf16 %v370_v11, %v369_v10  ;;  %v699_v16 = vpack.c.bf16 %v277_v15, %v276_v14  ;;  %v279_v18 = vld [vmem:[#allocation5 + $0x48] sm:$0xff]  ;;  %v280_v20 = vld [vmem:[#allocation5 + $0x50] sm:$0xff]  ;;  %v281_v21 = vld [vmem:[#allocation5 + $0x58] sm:$0xff]  ;;  %p900_p1 = scmp.ne.s32.totalorder %s1218_s7, %s899_s9  ;;  %s979_s22 = smov [#allocation8]  }
  0x70   : > { %v702_v19 = vpack.c.bf16 %v279_v18, %v278_v17  ;;  %v705_v22 = vpack.c.bf16 %v281_v21, %v280_v20  ;;  %v282_v23 = vld [vmem:[#allocation5 + $0x60] sm:$0xff]  ;;  %v283_v24 = vld [vmem:[#allocation5 + $0x68] sm:$0xff]  ;;  %v284_v26 = vld [vmem:[#allocation5 + $0x70] sm:$0xff]  ;;  %s903_s13 = sshll.u32 %s979_s22, 4  ;;  %s904_s13 = int_to_ptr.vmem [resolvable:$false] %s903_s13 }
  0x71   : > { %715 = vmatpush3.bf16.msra.mxu1 %v714_v13  ;;  %v708_v25 = vpack.c.bf16 %v283_v24, %v282_v23  ;;  %v285_v27 = vld [vmem:[#allocation5 + $0x78] sm:$0xff]  ;;  %v371_v30 = vld [vmem:[#allocation7 + $0x10] sm:$0xff]  ;;  %v373_v33 = vld [vmem:[#allocation7 + $0x20] sm:$0xff]  ;;  %p901_p2 = pnand %p900_p1, %p1122_p4  ;;  %s905_s29 = scalar_lea.vmem %s904_s13, 256 }
  0x72   : > { %694 = vmatpush3.bf16.msra.mxu0 %v693_v7  ;;  %716 = vmatprep.subr.bf16.mxu1 %v976_v0  ;;  %v711_v28 = vpack.c.bf16 %v285_v27, %v284_v26  ;;  %v269_v29 = vld [vmem:[%s1177_s17] sm:$0xff]  ;;  %v374_v34 = vld [vmem:[#allocation7 + $0x28] sm:$0xff]  ;;  %v377_v39 = vld [vmem:[#allocation7 + $0x40] sm:$0xff]  ;;  %p906_p8 = scmp.lt.s32.totalorder %s1218_s7, %s904_s13  ;;  %p907_p13 = scmp.lt.s32.totalorder %s905_s29, %s899_s9 }
  0x73   : > { %695 = vmatprep.subr.bf16.mxu0 %v976_v0  ;;  %v372_v31 = vld [vmem:[#allocation7 + $0x18] sm:$0xff]  ;;  %v720_v35 = vpack.c.bf16 %v374_v34, %v373_v33  ;;  %v375_v36 = vld [vmem:[#allocation7 + $0x30] sm:$0xff]  ;;  %v378_v40 = vld [vmem:[#allocation7 + $0x48] sm:$0xff]  ;;  %p902_p6 = pneg %p901_p2 }
  0x74   : > { %v717_v32 = vpack.c.bf16 %v372_v31, %v371_v30  ;;  %v376_v37 = vld [vmem:[#allocation7 + $0x38] sm:$0xff]  ;;  %v726_v41 = vpack.c.bf16 %v378_v40, %v377_v39  ;;  %v379_v42 = vld [vmem:[#allocation7 + $0x50] sm:$0xff]  ;;  %v381_v45 = vld [vmem:[#allocation7 + $0x60] sm:$0xff]  ;;  %p908_p3 = por %p907_p13, %p906_p8 }
  0x75   : > { %v723_v38 = vpack.c.bf16 %v376_v37, %v375_v36  ;;  %v380_v43 = vld [vmem:[#allocation7 + $0x58] sm:$0xff]  ;;  %v382_v46 = vld [vmem:[#allocation7 + $0x68] sm:$0xff]  ;;  %v383_v48 = vld [vmem:[#allocation7 + $0x70] sm:$0xff] }
  0x76   : > { %697 = vmatpush3.bf16.msra.mxu0 %v696_v12  ;;  %718 = vmatpush3.bf16.msra.mxu1 %v717_v32  ;;  %v729_v44 = vpack.c.bf16 %v380_v43, %v379_v42  ;;  %v732_v47 = vpack.c.bf16 %v382_v46, %v381_v45  ;;  %v384_v49 = vld [vmem:[#allocation7 + $0x78] sm:$0xff]  ;;  %v578_v51 = vld [vmem:[%s1261_s2] ss:$0 sm:$0xff]  ;;  %p909_p7 = pnand %p908_p3, %p902_p6 }
  0x77   : > { %698 = vmatprep.subr.bf16.mxu0 %v976_v0  ;;  %719 = vmatprep.subr.bf16.mxu1 %v976_v0  ;;  %v735_v50 = vpack.c.bf16 %v384_v49, %v383_v48  ;;  %v580_v59 = vld [vmem:[%s1263_s4] ss:$0 sm:$0xff] }
  0x7a   : > { %700 = vmatpush3.bf16.msra.mxu0 %v699_v16  ;;  %721 = vmatpush3.bf16.msra.mxu1 %v720_v35 }
  0x7b   : > { %701 = vmatprep.subr.bf16.mxu0 %v976_v0  ;;  %722 = vmatprep.subr.bf16.mxu1 %v976_v0 }
  0x7e   : > { %703 = vmatpush3.bf16.msra.mxu0 %v702_v19  ;;  %724 = vmatpush3.bf16.msra.mxu1 %v723_v38 }
  0x7f   : > { %704 = vmatprep.subr.bf16.mxu0 %v976_v0  ;;  %725 = vmatprep.subr.bf16.mxu1 %v976_v0 }
  0x82   : > { %706 = vmatpush3.bf16.msra.mxu0 %v705_v22  ;;  %727 = vmatpush3.bf16.msra.mxu1 %v726_v41 }
  0x83   : > { %707 = vmatprep.subr.bf16.mxu0 %v976_v0  ;;  %728 = vmatprep.subr.bf16.mxu1 %v976_v0 }
  0x86   : > { %709 = vmatpush3.bf16.msra.mxu0 %v708_v25  ;;  %730 = vmatpush3.bf16.msra.mxu1 %v729_v44 }
  0x87   : > { %710 = vmatprep.subr.bf16.mxu0 %v976_v0  ;;  %731 = vmatprep.subr.bf16.mxu1 %v976_v0 }
  0x8a   : > { %712 = vmatpush3.bf16.msra.mxu0 %v711_v28  ;;  %733 = vmatpush3.bf16.msra.mxu1 %v732_v47 }
  0x8b   : > { %734 = vmatprep.subr.bf16.mxu1 %v976_v0 }
  0x8d   : > { %652 = vmatmul.mubr.f32.vlgmr.msra.gmra.mrb[0].mxu0 %v269_v29 }
  0x8e   : > { %736 = vmatpush3.bf16.msra.mxu1 %v735_v50 }
 0x160   : > { %v359_v52 = vpop.f32.mrb[0].mxu0 }
 0x161   : > { %v360_v53 = vadd.f32 %v578_v51, %v359_v52  ;;  %v653_v54 = vpop.f32.mrb[1].mxu0 }
 0x163   : > { %v579_v55 = vmul.f32 -1.442695, %v360_v53 }
 0x165   : > { %809 = vpow2.f32 %v579_v55 }
 0x16f   : > { %v810_v56 = vpop.eup %809 }
 0x170   : > { %v366_v57 = vadd.f32 1.0, %v810_v56 }
 0x172   : > { %811 = vrcp.f32 %v366_v57 }
 0x17c   : > { %v812_v58 = vpop.eup %811 }
 0x17d   : > { %687 = vmatmul.mubr.f32.vlgmr.msra.gmra.mrb[0].mxu1 %v812_v58 }
 0x250   : > { %v458_v60 = vpop.f32.mrb[0].mxu1 }
 0x251   : > { %v459_v61 = vadd.f32 %v580_v59, %v458_v60  ;;  %v688_v62 = vpop.f32.mrb[1].mxu1 }
 0x253   : > { %462 = vst [vmem:[%s268_s28] sm:$0xff] %v459_v61 }
 0x254   : > { %912 = shalt.err (!%p909_p7)
}
 0x255   : > { %s913_s12 = scalar_lea.hbm %s1216_s15, 128  ;;  %s917_s26 = scalar_lea.hbm %s1264_s5, 512 }
 0x256   : > { %p914_p9 = scmp.ne.s32.totalorder %s1216_s15, %s913_s12  ;;  %p918_p0 = scmp.lt.u32.totalorder %s1216_s15, %s1264_s5 }
 0x257   : > { %p919_p10 = scmp.lt.u32.totalorder %s917_s26, %s913_s12  ;;  %p921_p1 = scmp.lt.u32.totalorder %s913_s12, %s1216_s15 }
 0x258   : > { %p915_p12 = pnand %p914_p9, %p1122_p4 }
 0x259   : > { %p920_p11 = por %p919_p10, %p918_p0 }
 0x25a   : > { %p916_p5 = pneg %p915_p12 }
 0x25b   : > { %p922_p2 = por %p921_p1, %p920_p11 }
 0x25d   : > { %p923_p6 = pnand %p922_p2, %p916_p5 }
 0x25f   : > { %926 = shalt.err (!%p923_p6)
}
 0x260   : > { %747 = dma.vmem_to_hbm [thread:$0]  (%p1122_p4), %s1218_s7, 128, %s1216_s15, %s464_s16  }
 0x261 PF: > { %p769_p8 = scmp.ge.s32.totalorder %s969_s21, 2  ;;  %s489_s11 = sand.u32 1, %s957_s18  }
 0x262   : > { %p1279_p13 = scmp.ne.s32.totalorder %s1269_s25, 0  ;;  %s490_s28 = scalar_lea.sflag [#allocation4], %s489_s11 }
 0x264   : > { %p761_p3 = pnand %p769_p8, %p1279_p13 }
 0x266   : > { %952 = dma.done.wait (!%p761_p3), %s490_s28, 128  }
 0x267   : > { %954 = vsyncadd (!%p761_p3), %s490_s28, 4294967168  ;;  %p19_p7 = scmp.ge.s32.totalorder %s1112_s14, 6   ;;  %s1280_s18 = smov %s961_s19 }
 0x268   : > { %s1281_s19 = smov %s965_s20  ;;  %s1282_s20 = smov %s1128_s27 }
 0x269   : > { %s1283_s21 = smov %s1112_s14  ;;  %21 = sbr.rel (!%p19_p7) target bundleno = 6 (0x6), region = 93 }
 0x270   :  { %495 = vsyncpa [#allocation3], 1 }
 0x271   :  { %497 = vsyncpa [#allocation3 + $0x1], 1 }
 0x272   :  { %498 = vsyncpa [#allocation6], 1 }
 0x273   :  { %499 = vsyncpa [#allocation4], 1 }
 0x274   :  { %501 = vsyncpa [#allocation4 + $0x1], 1 }

// kernel: tpu_custom_call.1
= control target key start
LH: loop header
LB: loop body
LE: loop exit
PB: predicated region body
PF: predicated region fallthrough
CT: control target
= control target key end

     0   :  { %10 = vsyncpa [#allocation3], 0  ;;  %s1259_s0 = inlined_call_operand.hbm [shape: f32[32,128], index: 0, kind: input, shape index: {}]   ;;  %s1260_s1 = inlined_call_operand.hbm [shape: f32[128,128], index: 1, kind: input, shape index: {}]   ;;  %s1261_s2 = inlined_call_operand.vmem [shape: f32[1,128], index: 2, kind: input, shape index: {}]   ;;  %s1262_s3 = inlined_call_operand.hbm [shape: f32[128,128], index: 3, kind: input, shape index: {}]   ;;  %s1263_s4 = inlined_call_operand.vmem [shape: f32[1,128], index: 4, kind: input, shape index: {}]   ;;  %s1264_s5 = inlined_call_operand.hbm [shape: f32[32,128], index: 5, kind: output, shape index: {}]  }
   0x1   :  { %12 = vsyncpa [#allocation3 + $0x1], 0 }
   0x2   :  { %13 = vsyncpa [#allocation6], 0 }
   0x3   :  { %14 = vsyncpa [#allocation4], 0 }
   0x4   :  { %16 = vsyncpa [#allocation4 + $0x1], 0  ;;  %s1010_s18 = smov 0   ;;  %s1012_s19 = smov 0  }
   0x5   :  { %s1014_s20 = smov 0   ;;  %s1016_s21 = smov 0  }
   0x6 LB: > { %s1031_s22 = sadd.s32 4294967295, %s969_s21   ;;  %s566_s23 = sadd.s32 4294967294, %s969_s21   ;;  %s969_s21 = sphi %s1016_s21, %s1283_s21   ;;  %s965_s20 = sphi %s1014_s20, %s1282_s20   ;;  %s961_s19 = sphi %s1012_s19, %s1281_s19   ;;  %s957_s18 = sphi %s1010_s18, %s1280_s18  }
   0x7   : > { %p42_p0 = scmp.ne.s32.totalorder %s961_s19, %s957_s18  ;;  %p1265_p1 = scmp.eq.s32.totalorder %s1031_s22, 0 }
   0x8   : > { %p156_p3 = scmp.eq.s32.totalorder %s566_s23, 3  ;;  %p567_p5 = scmp.ge.s32.totalorder %s969_s21, 1 }
   0x9   : > { %p1040_p4 = por %p1265_p1, %p42_p0  ;;  %p163_p7 = scmp.lt.s32.totalorder %s969_s21, 5 }
   0xa   : > { %p1045_p6 = por %p156_p3, %p42_p0  ;;  %s971_s27 = smov [#allocation5]  }
   0xb   : > { %s1268_s24 = scalar_select %p1040_p4, 1, 0 }
   0xc   : > { %s1269_s25 = scalar_select %p1045_p6, 1, 0 }
   0xd   : > { %p1050_p8 = pnand %p567_p5, %p163_p7  ;;  %s175_s28 = sshll.u32 %s971_s27, 4  ;;  %s176_s28 = int_to_ptr.vmem [resolvable:$true] %s175_s28 }
   0xe   : > { %s972_s30 = smov [#allocation7]   ;;  %s813_s9 = scalar_lea.hbm %s1260_s1, 2048 }
   0xf   : > { %s1270_s26 = scalar_select %p1050_p8, 1, 0 }
  0x10   : > { %p749_p9 = pneg %p1050_p8  ;;  %s191_s6 = sshll.u32 %s972_s30, 4  ;;  %s1062_s6 = int_to_ptr.vmem [resolvable:$true] %s191_s6 }
  0x11   : > { %p814_p11 = scmp.ne.s32.totalorder %s1260_s1, %s813_s9  ;;  %p820_p3 = scmp.lt.u32.totalorder %s813_s9, %s1260_s1 }
  0x12   : > { %p1058_p10 = pnand %p749_p9, %p1265_p1 }
  0x14   : > { %p815_p12 = pneg %p1058_p10 }
  0x16   : > { %p816_p13 = pnand %p815_p12, %p814_p11 }
  0x18   : > { %p817_p0 = pneg %p816_p13 }
  0x1a   : > { %p822_p5 = pnand %p820_p3, %p817_p0 }
  0x1c   : > { %825 = shalt.err (!%p822_p5)
}
  0x1d   : > { %s826_s14 = scalar_lea.vmem %s176_s28, 2048  ;;  %p834_p2 = scmp.lt.s32.totalorder %s176_s28, %s176_s28 }
  0x1e   : > { %p827_p7 = scmp.ne.s32.totalorder %s176_s28, %s826_s14  ;;  %p835_p6 = scmp.lt.s32.totalorder %s826_s14, %s826_s14 }
  0x20   : > { %p829_p9 = pnand %p827_p7, %p815_p12  ;;  %p836_p4 = por %p835_p6, %p834_p2 }
  0x22   : > { %p830_p1 = pneg %p829_p9 }
  0x24   : > { %p837_p8 = pnand %p836_p4, %p830_p1 }
  0x26   : > { %840 = shalt.err (!%p837_p8)
}
  0x27   : > { %s973_s15 = smov 128   ;;  %s974_s16 = smov 8  }
  0x28   : > { %752 = dma.hbm_to_vmem [thread:$0]  (!%p1058_p10), %s1260_s1, 2048, %s176_s28, [#allocation6], %s973_s15, %s973_s15, %s974_s16  }
  0x29   : > { %s841_s7 = scalar_lea.hbm %s1262_s3, 2048 }
  0x2a   : > { %p842_p11 = scmp.ne.s32.totalorder %s1262_s3, %s841_s7  ;;  %p848_p4 = scmp.lt.u32.totalorder %s841_s7, %s1262_s3 }
  0x2c   : > { %p844_p1 = pnand %p842_p11, %p815_p12 }
  0x2e   : > { %p845_p2 = pneg %p844_p1 }
  0x30   : > { %p850_p6 = pnand %p848_p4, %p845_p2 }
  0x32   : > { %853 = shalt.err (!%p850_p6)
}
  0x33   : > { %s854_s28 = scalar_lea.vmem %s1062_s6, 2048  ;;  %p862_p3 = scmp.lt.s32.totalorder %s1062_s6, %s1062_s6 }
  0x34   : > { %p855_p8 = scmp.ne.s32.totalorder %s1062_s6, %s854_s28  ;;  %p863_p5 = scmp.lt.s32.totalorder %s854_s28, %s854_s28 }
  0x36   : > { %p857_p13 = pnand %p855_p8, %p815_p12  ;;  %p864_p7 = por %p863_p5, %p862_p3 }
  0x38   : > { %p858_p0 = pneg %p857_p13 }
  0x3a   : > { %p865_p9 = pnand %p864_p7, %p858_p0 }
  0x3c   : > { %868 = shalt.err (!%p865_p9)
}
  0x3d   : > { %755 = dma.hbm_to_vmem [thread:$0]  (!%p1058_p10), %s1262_s3, 2048, %s1062_s6, [#allocation6], %s973_s15, %s973_s15, %s974_s16  }
  0x3e   : > { %s1112_s14 = sadd.s32 1, %s969_s21   ;;  %s29_s29 = sadd.s32 1, %s965_s20 }
  0x3f   : > { %s26_s17 = ssub.s32 %s969_s21, %s1112_s14  ;;  %p36_p12 = scmp.ne.s32.totalorder %s965_s20, %s961_s19 }
  0x40   : > { %p27_p11 = scmp.eq.s32.totalorder %s26_s17, 0  ;;  %p37_p1 = scmp.eq.s32.totalorder %s969_s21, 0 }
  0x41   : > { %p1272_p2 = scmp.eq.s32.totalorder %s1031_s22, 3  ;;  %p766_p6 = scmp.lt.s32.totalorder %s969_s21, 4 }
  0x42   : > { %s1128_s27 = scalar_select %p27_p11, %s965_s20, %s29_s29  }
  0x43   : > { %p1122_p4 = por %p1272_p2, %p36_p12  ;;  %p38_p8 = por %p37_p1, %p36_p12 }
  0x44   : > { %s208_s30 = sand.u32 1, %s965_s20   ;;  %s572_s6 = sshll.u32 %s969_s21, 7 }
  0x45   : > { %s571_s7 = sshll.u32 %s208_s30, 3  ;;  %s1135_s8 = scalar_lea.hbm %s1259_s0, %s572_s6 }
  0x46   : > { %s212_s9 = scalar_lea.vmem [#allocation2], %s571_s7  ;;  %p1139_p10 = pnand %p766_p6, %p38_p8 }
  0x47   : > { %s219_s10 = sshll.u32 %s212_s9, 4  ;;  %s209_s28 = scalar_lea.sflag [#allocation3], %s208_s30  ;;  %s1137_s10 = int_to_ptr.vmem [resolvable:$true] %s219_s10 }
  0x48   : > { %s869_s12 = scalar_lea.hbm %s1135_s8, 128  ;;  %p871_p0 = pneg %p1139_p10 }
  0x49   : > { %p870_p13 = scmp.ne.s32.totalorder %s1135_s8, %s869_s12  ;;  %s874_s17 = scalar_lea.hbm %s1259_s0, 512 }
  0x4a   : > { %p875_p7 = scmp.lt.u32.totalorder %s1135_s8, %s1259_s0  ;;  %p876_p9 = scmp.lt.u32.totalorder %s874_s17, %s869_s12 }
  0x4b   : > { %p872_p3 = pnand %p871_p0, %p870_p13  ;;  %p878_p11 = scmp.lt.u32.totalorder %s869_s12, %s1135_s8 }
  0x4c   : > { %p877_p12 = por %p876_p9, %p875_p7 }
  0x4d   : > { %p873_p5 = pneg %p872_p3 }
  0x4e   : > { %p879_p1 = por %p878_p11, %p877_p12 }
  0x50   : > { %p880_p2 = pnand %p879_p1, %p873_p5 }
  0x52   : > { %883 = shalt.err (!%p880_p2)
}
  0x53   : > { %s884_s30 = scalar_lea.vmem %s1137_s10, 128  ;;  %s975_s15 = smov [#allocation2]  }
  0x54   : > { %p885_p6 = scmp.ne.s32.totalorder %s1137_s10, %s884_s30  ;;  %s889_s16 = sshll.u32 %s975_s15, 4  ;;  %s890_s16 = int_to_ptr.vmem [resolvable:$false] %s889_s16 }
  0x55   : > { %s891_s9 = scalar_lea.vmem %s890_s16, 256  ;;  %p892_p3 = scmp.lt.s32.totalorder %s1137_s10, %s890_s16 }
  0x56   : > { %p887_p8 = pnand %p885_p6, %p871_p0  ;;  %p893_p7 = scmp.lt.s32.totalorder %s891_s9, %s884_s30 }
  0x58   : > { %p888_p13 = pneg %p887_p8  ;;  %p894_p9 = por %p893_p7, %p892_p3 }
  0x5a   : > { %p895_p12 = pnand %p894_p9, %p888_p13 }
  0x5c   : > { %898 = shalt.err (!%p895_p12)
}
  0x5d   : > { %759 = dma.hbm_to_vmem [thread:$0]  (!%p1139_p10), %s1135_s8, 128, %s1137_s10, %s209_s28  }
  0x5e   : > { %p1275_p5 = scmp.ne.s32.totalorder %s1270_s26, 0 }
  0x5f   : > { %s1171_s12 = sand.u32 (!%p1275_p5), 1, %s961_s19   ;;  %p1276_p0 = scmp.ne.s32.totalorder (!%p1275_p5), %s1268_s24, 0 }
  0x60   : > { %228 = sbr.rel (%p1275_p5) target bundleno = 609 (0x261), region = 40  ;;  %s574_s13 = sshll.u32 (!%p1275_p5), %s1171_s12, 3 }
  0x61   : > { %s231_s29 = scalar_lea.sflag (!%p1275_p5), [#allocation3], %s1171_s12  ;;  %s1177_s17 = scalar_lea.vmem (!%p1275_p5), [#allocation2], %s574_s13 }
  0x67   : > { %944 = dma.done.wait (%p1276_p0), %s231_s29, 128  }
  0x68   : > { %946 = vsyncadd (%p1276_p0), %s231_s29, 4294967168  ;;  %p1277_p10 = scmp.eq.s32.totalorder %s1031_s22, 0 }
  0x6a   : > { %948 = dma.done.wait (%p1277_p10), [#allocation6], 4096   ;;  %p1278_p11 = pmov %p1277_p10 }
  0x6b   : > { %v976_v0 = vmov 0.0|0.0   ;;  %vm977_vm0 = vmmov 0   ;;  %v978_v1 = vmov 0.0   ;;  %v270_v2 = vld [vmem:[#allocation5] sm:$0xff]  ;;  %v271_v3 = vld [vmem:[#allocation5 + $0x8] sm:$0xff]  ;;  %v272_v4 = vld [vmem:[#allocation5 + $0x10] sm:$0xff] }
  0x6c   : > { %950 = vsyncadd (%p1278_p11), [#allocation6], 4294963200  ;;  %689 = vmatprep.subr.bf16.mxu0 %v976_v0  ;;  %651 = vmatprep.mubr.msk.f32.mxu0 %vm977_vm0, %v978_v1  ;;  %v690_v5 = vpack.c.bf16 %v271_v3, %v270_v2  ;;  %v273_v6 = vld [vmem:[#allocation5 + $0x18] sm:$0xff]  ;;  %v274_v8 = vld [vmem:[#allocation5 + $0x20] sm:$0xff]  ;;  %s582_s11 = sshll.u32 %s1031_s22, 7  ;;  %s268_s28 = scalar_lea.vmem [#allocation8], %s574_s13 }
  0x6d   : > { %713 = vmatprep.subr.bf16.mxu1 %v976_v0  ;;  %686 = vmatprep.mubr.msk.f32.mxu1 %vm977_vm0, %v978_v1  ;;  %v693_v7 = vpack.c.bf16 %v273_v6, %v272_v4  ;;  %v275_v9 = vld [vmem:[#allocation5 + $0x28] sm:$0xff]  ;;  %v369_v10 = vld [vmem:[#allocation7] sm:$0xff]  ;;  %v276_v14 = vld [vmem:[#allocation5 + $0x30] sm:$0xff]  ;;  %s477_s7 = sshll.u32 %s268_s28, 4  ;;  %s1216_s15 = scalar_lea.hbm %s1264_s5, %s582_s11  ;;  %s1218_s7 = int_to_ptr.vmem [resolvable:$true] %s477_s7 }
  0x6e   : > { %691 = vmatpush3.bf16.msra.mxu0 %v690_v5  ;;  %v370_v11 = vld [vmem:[#allocation7 + $0x8] sm:$0xff]  ;;  %v696_v12 = vpack.c.bf16 %v275_v9, %v274_v8  ;;  %v277_v15 = vld [vmem:[#allocation5 + $0x38] sm:$0xff]  ;;  %v278_v17 = vld [vmem:[#allocation5 + $0x40] sm:$0xff]  ;;  %s464_s16 = scalar_lea.sflag [#allocation4], %s1171_s12  ;;  %s899_s9 = scalar_lea.vmem %s1218_s7, 128 }
  0x6f   : > { %692 = vmatprep.subr.bf16.mxu0 %v976_v0  ;;  %v714_v13 = vpack.c.bf16 %v370_v11, %v369_v10  ;;  %v699_v16 = vpack.c.bf16 %v277_v15, %v276_v14  ;;  %v279_v18 = vld [vmem:[#allocation5 + $0x48] sm:$0xff]  ;;  %v280_v20 = vld [vmem:[#allocation5 + $0x50] sm:$0xff]  ;;  %v281_v21 = vld [vmem:[#allocation5 + $0x58] sm:$0xff]  ;;  %p900_p1 = scmp.ne.s32.totalorder %s1218_s7, %s899_s9  ;;  %s979_s22 = smov [#allocation8]  }
  0x70   : > { %v702_v19 = vpack.c.bf16 %v279_v18, %v278_v17  ;;  %v705_v22 = vpack.c.bf16 %v281_v21, %v280_v20  ;;  %v282_v23 = vld [vmem:[#allocation5 + $0x60] sm:$0xff]  ;;  %v283_v24 = vld [vmem:[#allocation5 + $0x68] sm:$0xff]  ;;  %v284_v26 = vld [vmem:[#allocation5 + $0x70] sm:$0xff]  ;;  %s903_s13 = sshll.u32 %s979_s22, 4  ;;  %s904_s13 = int_to_ptr.vmem [resolvable:$false] %s903_s13 }
  0x71   : > { %715 = vmatpush3.bf16.msra.mxu1 %v714_v13  ;;  %v708_v25 = vpack.c.bf16 %v283_v24, %v282_v23  ;;  %v285_v27 = vld [vmem:[#allocation5 + $0x78] sm:$0xff]  ;;  %v371_v30 = vld [vmem:[#allocation7 + $0x10] sm:$0xff]  ;;  %v373_v33 = vld [vmem:[#allocation7 + $0x20] sm:$0xff]  ;;  %p901_p2 = pnand %p900_p1, %p1122_p4  ;;  %s905_s29 = scalar_lea.vmem %s904_s13, 256 }
  0x72   : > { %694 = vmatpush3.bf16.msra.mxu0 %v693_v7  ;;  %716 = vmatprep.subr.bf16.mxu1 %v976_v0  ;;  %v711_v28 = vpack.c.bf16 %v285_v27, %v284_v26  ;;  %v269_v29 = vld [vmem:[%s1177_s17] sm:$0xff]  ;;  %v374_v34 = vld [vmem:[#allocation7 + $0x28] sm:$0xff]  ;;  %v377_v39 = vld [vmem:[#allocation7 + $0x40] sm:$0xff]  ;;  %p906_p8 = scmp.lt.s32.totalorder %s1218_s7, %s904_s13  ;;  %p907_p13 = scmp.lt.s32.totalorder %s905_s29, %s899_s9 }
  0x73   : > { %695 = vmatprep.subr.bf16.mxu0 %v976_v0  ;;  %v372_v31 = vld [vmem:[#allocation7 + $0x18] sm:$0xff]  ;;  %v720_v35 = vpack.c.bf16 %v374_v34, %v373_v33  ;;  %v375_v36 = vld [vmem:[#allocation7 + $0x30] sm:$0xff]  ;;  %v378_v40 = vld [vmem:[#allocation7 + $0x48] sm:$0xff]  ;;  %p902_p6 = pneg %p901_p2 }
  0x74   : > { %v717_v32 = vpack.c.bf16 %v372_v31, %v371_v30  ;;  %v376_v37 = vld [vmem:[#allocation7 + $0x38] sm:$0xff]  ;;  %v726_v41 = vpack.c.bf16 %v378_v40, %v377_v39  ;;  %v379_v42 = vld [vmem:[#allocation7 + $0x50] sm:$0xff]  ;;  %v381_v45 = vld [vmem:[#allocation7 + $0x60] sm:$0xff]  ;;  %p908_p3 = por %p907_p13, %p906_p8 }
  0x75   : > { %v723_v38 = vpack.c.bf16 %v376_v37, %v375_v36  ;;  %v380_v43 = vld [vmem:[#allocation7 + $0x58] sm:$0xff]  ;;  %v382_v46 = vld [vmem:[#allocation7 + $0x68] sm:$0xff]  ;;  %v383_v48 = vld [vmem:[#allocation7 + $0x70] sm:$0xff] }
  0x76   : > { %697 = vmatpush3.bf16.msra.mxu0 %v696_v12  ;;  %718 = vmatpush3.bf16.msra.mxu1 %v717_v32  ;;  %v729_v44 = vpack.c.bf16 %v380_v43, %v379_v42  ;;  %v732_v47 = vpack.c.bf16 %v382_v46, %v381_v45  ;;  %v384_v49 = vld [vmem:[#allocation7 + $0x78] sm:$0xff]  ;;  %v578_v51 = vld [vmem:[%s1261_s2] ss:$0 sm:$0xff]  ;;  %p909_p7 = pnand %p908_p3, %p902_p6 }
  0x77   : > { %698 = vmatprep.subr.bf16.mxu0 %v976_v0  ;;  %719 = vmatprep.subr.bf16.mxu1 %v976_v0  ;;  %v735_v50 = vpack.c.bf16 %v384_v49, %v383_v48  ;;  %v580_v59 = vld [vmem:[%s1263_s4] ss:$0 sm:$0xff] }
  0x7a   : > { %700 = vmatpush3.bf16.msra.mxu0 %v699_v16  ;;  %721 = vmatpush3.bf16.msra.mxu1 %v720_v35 }
  0x7b   : > { %701 = vmatprep.subr.bf16.mxu0 %v976_v0  ;;  %722 = vmatprep.subr.bf16.mxu1 %v976_v0 }
  0x7e   : > { %703 = vmatpush3.bf16.msra.mxu0 %v702_v19  ;;  %724 = vmatpush3.bf16.msra.mxu1 %v723_v38 }
  0x7f   : > { %704 = vmatprep.subr.bf16.mxu0 %v976_v0  ;;  %725 = vmatprep.subr.bf16.mxu1 %v976_v0 }
  0x82   : > { %706 = vmatpush3.bf16.msra.mxu0 %v705_v22  ;;  %727 = vmatpush3.bf16.msra.mxu1 %v726_v41 }
  0x83   : > { %707 = vmatprep.subr.bf16.mxu0 %v976_v0  ;;  %728 = vmatprep.subr.bf16.mxu1 %v976_v0 }
  0x86   : > { %709 = vmatpush3.bf16.msra.mxu0 %v708_v25  ;;  %730 = vmatpush3.bf16.msra.mxu1 %v729_v44 }
  0x87   : > { %710 = vmatprep.subr.bf16.mxu0 %v976_v0  ;;  %731 = vmatprep.subr.bf16.mxu1 %v976_v0 }
  0x8a   : > { %712 = vmatpush3.bf16.msra.mxu0 %v711_v28  ;;  %733 = vmatpush3.bf16.msra.mxu1 %v732_v47 }
  0x8b   : > { %734 = vmatprep.subr.bf16.mxu1 %v976_v0 }
  0x8d   : > { %652 = vmatmul.mubr.f32.vlgmr.msra.gmra.mrb[0].mxu0 %v269_v29 }
  0x8e   : > { %736 = vmatpush3.bf16.msra.mxu1 %v735_v50 }
 0x160   : > { %v359_v52 = vpop.f32.mrb[0].mxu0 }
 0x161   : > { %v360_v53 = vadd.f32 %v578_v51, %v359_v52  ;;  %v653_v54 = vpop.f32.mrb[1].mxu0 }
 0x163   : > { %v579_v55 = vmul.f32 -1.442695, %v360_v53 }
 0x165   : > { %809 = vpow2.f32 %v579_v55 }
 0x16f   : > { %v810_v56 = vpop.eup %809 }
 0x170   : > { %v366_v57 = vadd.f32 1.0, %v810_v56 }
 0x172   : > { %811 = vrcp.f32 %v366_v57 }
 0x17c   : > { %v812_v58 = vpop.eup %811 }
 0x17d   : > { %687 = vmatmul.mubr.f32.vlgmr.msra.gmra.mrb[0].mxu1 %v812_v58 }
 0x250   : > { %v458_v60 = vpop.f32.mrb[0].mxu1 }
 0x251   : > { %v459_v61 = vadd.f32 %v580_v59, %v458_v60  ;;  %v688_v62 = vpop.f32.mrb[1].mxu1 }
 0x253   : > { %462 = vst [vmem:[%s268_s28] sm:$0xff] %v459_v61 }
 0x254   : > { %912 = shalt.err (!%p909_p7)
}
 0x255   : > { %s913_s12 = scalar_lea.hbm %s1216_s15, 128  ;;  %s917_s26 = scalar_lea.hbm %s1264_s5, 512 }
 0x256   : > { %p914_p9 = scmp.ne.s32.totalorder %s1216_s15, %s913_s12  ;;  %p918_p0 = scmp.lt.u32.totalorder %s1216_s15, %s1264_s5 }
 0x257   : > { %p919_p10 = scmp.lt.u32.totalorder %s917_s26, %s913_s12  ;;  %p921_p1 = scmp.lt.u32.totalorder %s913_s12, %s1216_s15 }
 0x258   : > { %p915_p12 = pnand %p914_p9, %p1122_p4 }
 0x259   : > { %p920_p11 = por %p919_p10, %p918_p0 }
 0x25a   : > { %p916_p5 = pneg %p915_p12 }
 0x25b   : > { %p922_p2 = por %p921_p1, %p920_p11 }
 0x25d   : > { %p923_p6 = pnand %p922_p2, %p916_p5 }
 0x25f   : > { %926 = shalt.err (!%p923_p6)
}
 0x260   : > { %747 = dma.vmem_to_hbm [thread:$0]  (%p1122_p4), %s1218_s7, 128, %s1216_s15, %s464_s16  }
 0x261 PF: > { %p769_p8 = scmp.ge.s32.totalorder %s969_s21, 2  ;;  %s489_s11 = sand.u32 1, %s957_s18  }
 0x262   : > { %p1279_p13 = scmp.ne.s32.totalorder %s1269_s25, 0  ;;  %s490_s28 = scalar_lea.sflag [#allocation4], %s489_s11 }
 0x264   : > { %p761_p3 = pnand %p769_p8, %p1279_p13 }
 0x266   : > { %952 = dma.done.wait (!%p761_p3), %s490_s28, 128  }
 0x267   : > { %954 = vsyncadd (!%p761_p3), %s490_s28, 4294967168  ;;  %p19_p7 = scmp.ge.s32.totalorder %s1112_s14, 6   ;;  %s1280_s18 = smov %s961_s19 }
 0x268   : > { %s1281_s19 = smov %s965_s20  ;;  %s1282_s20 = smov %s1128_s27 }
 0x269   : > { %s1283_s21 = smov %s1112_s14  ;;  %21 = sbr.rel (!%p19_p7) target bundleno = 6 (0x6), region = 93 }
 0x270   :  { %495 = vsyncpa [#allocation3], 1 }
 0x271   :  { %497 = vsyncpa [#allocation3 + $0x1], 1 }
 0x272   :  { %498 = vsyncpa [#allocation6], 1 }
 0x273   :  { %499 = vsyncpa [#allocation4], 1 }
 0x274   :  { %501 = vsyncpa [#allocation4 + $0x1], 1 }

</bundles_post_ra>
